<compile_context>
chip_gen: v7x
topology: tpu7x:2x2x1
jax: 0.10.0
libtpu: 0.0.40
codegen_flags: <defaults>
</compile_context>

<pallas_src>
import math
import numpy as np

import jax
import jax.numpy as jnp
from jax import lax
from jax.experimental import pallas as pl
from jax.experimental.pallas import tpu as pltpu

EPS = float(jnp.finfo(jnp.float32).eps)          # torch RMSNorm default eps
_NEG_INF = float(jnp.finfo(jnp.float32).min) / 2.0  # dtype-aware large-negative mask
_VMEM_LIMIT = 32 * 1024 * 1024                   # safe on v5e/v6e/v7x


def _tile(dim, target):
    """Block size along `dim`: full dim if small, else the (8/128-aligned) target."""
    return dim if dim <= target else target


# ----------------------- fused RMSNorm + QKV projection ----------------------

def fused_norm_qkv(x2d, g2d, w_qkv):
    """x2d: (M, D), g2d: (1, D), w_qkv: (D, F) -> (M, F)."""
    M, D = x2d.shape
    F = w_qkv.shape[1]
    tm = _tile(M, 256)
    tf = _tile(F, 512)

    def kernel(x_ref, g_ref, w_ref, o_ref):
        xv = x_ref[...].astype(jnp.float32)
        ms = jnp.mean(xv * xv, axis=-1, keepdims=True)
        xn = xv * lax.rsqrt(ms + EPS) * g_ref[...].astype(jnp.float32)
        o_ref[...] = jnp.dot(
            xn, w_ref[...].astype(jnp.float32),
            preferred_element_type=jnp.float32).astype(o_ref.dtype)

    return pl.pallas_call(
        kernel,
        out_shape=jax.ShapeDtypeStruct((M, F), x2d.dtype),
        grid=(pl.cdiv(M, tm), pl.cdiv(F, tf)),
        in_specs=[pl.BlockSpec((tm, D), lambda i, j: (i, 0)),
                  pl.BlockSpec((1, D), lambda i, j: (0, 0)),
                  pl.BlockSpec((D, tf), lambda i, j: (0, j))],
        out_specs=pl.BlockSpec((tm, tf), lambda i, j: (i, j)),
        compiler_params=pltpu.CompilerParams(
            dimension_semantics=("parallel", "parallel"),
            vmem_limit_bytes=_VMEM_LIMIT),
    )(x2d, g2d, w_qkv)


# ----------------------------- flash attention -------------------------------

def flash_attention(q, k, v, *, heads, kv_heads, scale):
    """q: (B*H, N, Dh), k/v: (B*KVH, N, Dh) -> (B*H, N, Dh). Causal, GQA via index_map."""
    BH, N, Dh = q.shape
    H, KVH = heads, kv_heads
    tq = _tile(N, 128)
    tk = _tile(N, 128)
    nq = pl.cdiv(N, tq)
    nk = pl.cdiv(N, tk)

    # TODO(synk): for dim_head < 128, group multiple heads into the lane axis for
    # fully lane-dense blocks; blocked here by the (8,128) BlockSpec constraint
    # at Dh-granularity within an (H*Dh) last dim.

    def kernel(q_ref, k_ref, v_ref, o_ref, m_sc, l_sc, acc_sc):
        qi = pl.program_id(1)
        ki = pl.program_id(2)

        @pl.when(ki == 0)
        def _init():
            m_sc[...] = jnp.full_like(m_sc, -jnp.inf)
            l_sc[...] = jnp.zeros_like(l_sc)
            acc_sc[...] = jnp.zeros_like(acc_sc)

        # Causal tile skipping: KV tiles strictly in the future of this Q tile
        # contribute nothing -> skip the matmuls (recovers ~2x MXU work).
        @pl.when(ki * tk < (qi + 1) * tq)
        def _compute():
            qb = q_ref[0].astype(jnp.float32) * scale            # (tq, Dh)
            kb = k_ref[0].astype(jnp.float32)                    # (tk, Dh)
            # Contract last axes of both operands directly: no explicit K transpose.
            s = lax.dot_general(qb, kb, (((1,), (1,)), ((), ())),
                                preferred_element_type=jnp.float32)  # (tq, tk)
            row = qi * tq + lax.broadcasted_iota(jnp.int32, (tq, tk), 0)
            col = ki * tk + lax.broadcasted_iota(jnp.int32, (tq, tk), 1)
            s = jnp.where((col <= row) & (col < N), s, _NEG_INF)
            m_prev = m_sc[...]
            m_new = jnp.maximum(m_prev, jnp.max(s, axis=-1, keepdims=True))
            alpha = jnp.exp(m_prev - m_new)
            p = jnp.exp(s - m_new)
            l_sc[...] = alpha * l_sc[...] + jnp.sum(p, axis=-1, keepdims=True)
            acc_sc[...] = alpha * acc_sc[...] + jnp.dot(
                p.astype(v_ref.dtype), v_ref[0],
                preferred_element_type=jnp.float32)
            m_sc[...] = m_new

        @pl.when(ki == nk - 1)
        def _finalize():
            inv_l = pl.reciprocal(l_sc[...], approx=True)        # EUP slot, ~free
            o_ref[0] = (acc_sc[...] * inv_l).astype(o_ref.dtype)

    itemsize = q.dtype.itemsize
    cost = pl.CostEstimate(
        flops=int(4 * BH * N * N * Dh),
        transcendentals=int(BH * N * N),
        bytes_accessed=int((2 * q.size + k.size + v.size) * itemsize),
    )

    # GQA: query head index i uses KV head (i % KVH) of batch (i // H) -- no jnp.tile.
    kv_map = lambda i, qi, ki: ((i // H) * KVH + i % KVH, ki, 0)

    return pl.pallas_call(
        kernel,
        out_shape=jax.ShapeDtypeStruct((BH, N, Dh), q.dtype),
        grid=(BH, nq, nk),
        in_specs=[
            pl.BlockSpec((1, tq, Dh), lambda i, qi, ki: (i, qi, 0)),
            pl.BlockSpec((1, tk, Dh), kv_map),
            pl.BlockSpec((1, tk, Dh), kv_map),
        ],
        out_specs=pl.BlockSpec((1, tq, Dh), lambda i, qi, ki: (i, qi, 0)),
        scratch_shapes=[
            pltpu.VMEM((tq, 1), jnp.float32),    # running max
            pltpu.VMEM((tq, 1), jnp.float32),    # running sum
            pltpu.VMEM((tq, Dh), jnp.float32),   # accumulator
        ],
        compiler_params=pltpu.CompilerParams(
            dimension_semantics=("parallel", "parallel", "arbitrary"),
            vmem_limit_bytes=_VMEM_LIMIT),
        cost_estimate=cost,
    )(q, k, v)


# ------------------------------ tiled matmul ---------------------------------

def tiled_matmul(x, w):
    """x: (M, K), w: (K, N) -> (M, N). K-tiled with f32 VMEM accumulator."""
    M, K = x.shape
    _, N = w.shape
    tm = _tile(M, 256)
    tn = _tile(N, 256)
    tk_target = 512
    tk = tk_target if (K > tk_target and K % tk_target == 0) else K
    nk = K // tk

    def kernel(x_ref, w_ref, o_ref, acc_ref):
        @pl.when(pl.program_id(2) == 0)
        def _():
            acc_ref[...] = jnp.zeros_like(acc_ref)

        acc_ref[...] += jnp.dot(x_ref[...], w_ref[...],
                                preferred_element_type=jnp.float32)

        @pl.when(pl.program_id(2) == nk - 1)
        def _():
            o_ref[...] = acc_ref[...].astype(o_ref.dtype)

    return pl.pallas_call(
        kernel,
        out_shape=jax.ShapeDtypeStruct((M, N), x.dtype),
        grid=(pl.cdiv(M, tm), pl.cdiv(N, tn), nk),
        in_specs=[pl.BlockSpec((tm, tk), lambda i, j, k: (i, k)),
                  pl.BlockSpec((tk, tn), lambda i, j, k: (k, j))],
        out_specs=pl.BlockSpec((tm, tn), lambda i, j, k: (i, j)),
        scratch_shapes=[pltpu.VMEM((tm, tn), jnp.float32)],
        compiler_params=pltpu.CompilerParams(
            dimension_semantics=("parallel", "parallel", "arbitrary"),
            vmem_limit_bytes=_VMEM_LIMIT),
    )(x, w)


# ------------------------------- glue (JAX) ----------------------------------

def rotary_cos_sin(n, d, theta=10000.0):
    # matches rotary_embedding_torch defaults (freqs_for='lang', interleaved pairs)
    inv_freq = 1.0 / (theta ** (jnp.arange(0, d, 2, dtype=jnp.float32) / d))
    t = jnp.arange(n, dtype=jnp.float32)
    freqs = jnp.einsum("i,j->ij", t, inv_freq)     # (n, d/2)
    freqs = jnp.repeat(freqs, 2, axis=-1)          # (n, d): [f0,f0,f1,f1,...]
    return jnp.cos(freqs), jnp.sin(freqs)


def apply_rotary(x, cos, sin):
    # x: (b, h, n, d); interleaved rotate_half: pairs (x0, x1) -> (-x1, x0)
    x1 = x[..., 0::2]
    x2 = x[..., 1::2]
    rot = jnp.stack([-x2, x1], axis=-1).reshape(x.shape)
    return x * cos + rot * sin


def attention_forward(x, params, *, heads, kv_heads, dim_head):
    B, N, D = x.shape
    H, KVH, Dh = heads, kv_heads, dim_head
    dim_inner = H * Dh
    dim_kv_inner = KVH * Dh

    # Fused RMSNorm + Q|K|V projection (single kernel, single HBM read of x).
    w_qkv = jnp.concatenate([params["wq"], params["wk"], params["wv"]], axis=1)
    qkv = fused_norm_qkv(x.reshape(B * N, D), params["norm_w"].reshape(1, D), w_qkv)

    q = qkv[:, :dim_inner].reshape(B, N, H, Dh).transpose(0, 2, 1, 3)
    k = qkv[:, dim_inner:dim_inner + dim_kv_inner].reshape(B, N, KVH, Dh).transpose(0, 2, 1, 3)
    v = qkv[:, dim_inner + dim_kv_inner:].reshape(B, N, KVH, Dh).transpose(0, 2, 1, 3)

    cos, sin = rotary_cos_sin(N, Dh)
    q = apply_rotary(q, cos, sin)
    k = apply_rotary(k, cos, sin)

    scale = 1.0 / math.sqrt(Dh)
    out = flash_attention(q.reshape(B * H, N, Dh),
                          k.reshape(B * KVH, N, Dh),
                          v.reshape(B * KVH, N, Dh),
                          heads=H, kv_heads=KVH, scale=scale)
    out = out.reshape(B, H, N, Dh).transpose(0, 2, 1, 3).reshape(B * N, dim_inner)
    return tiled_matmul(out, params["wo"]).reshape(B, N, D)


def reference_forward(x, params, *, heads, kv_heads, dim_head):
    """Pure-JAX reference for numerical sanity check."""
    B, N, D = x.shape
    ms = jnp.mean(x * x, axis=-1, keepdims=True)
    xn = x * lax.rsqrt(ms + EPS) * params["norm_w"]
    q = (xn @ params["wq"]).reshape(B, N, heads, dim_head).transpose(0, 2, 1, 3)
    k = (xn @ params["wk"]).reshape(B, N, kv_heads, dim_head).transpose(0, 2, 1, 3)
    v = (xn @ params["wv"]).reshape(B, N, kv_heads, dim_head).transpose(0, 2, 1, 3)
    cos, sin = rotary_cos_sin(N, dim_head)
    q = apply_rotary(q, cos, sin)
    k = apply_rotary(k, cos, sin)
    g_rep = heads // kv_heads
    k = jnp.tile(k, (1, g_rep, 1, 1))
    v = jnp.tile(v, (1, g_rep, 1, 1))
    s = jnp.einsum("bhqd,bhkd->bhqk", q, k) / math.sqrt(dim_head)
    mask = jnp.tril(jnp.ones((N, N), dtype=bool))
    s = jnp.where(mask, s, -1e30)
    p = jax.nn.softmax(s, axis=-1)
    o = jnp.einsum("bhqk,bhkd->bhqd", p, v)
    o = o.transpose(0, 2, 1, 3).reshape(B, N, heads * dim_head)
    return o @ params["wo"]


# ---------------------------------- main -------------------------------------

if __name__ == "__main__":
    B, N = 2, 8
    dim, dim_head, heads, kv_heads = 32, 16, 4, 2
    dim_inner = heads * dim_head
    dim_kv_inner = kv_heads * dim_head

    key = jax.random.PRNGKey(0)
    kx, kq, kk, kv, ko = jax.random.split(key, 5)

    x = jax.random.normal(kx, (B, N, dim), dtype=jnp.float32)
    params = {
        "norm_w": jnp.ones((dim,), dtype=jnp.float32),  # torch RMSNorm default init
        "wq": 0.02 * jax.random.normal(kq, (dim, dim_inner), dtype=jnp.float32),
        "wk": 0.02 * jax.random.normal(kk, (dim, dim_kv_inner), dtype=jnp.float32),
        "wv": 0.02 * jax.random.normal(kv, (dim, dim_kv_inner), dtype=jnp.float32),
        "wo": 0.02 * jax.random.normal(ko, (dim_inner, dim), dtype=jnp.float32),
    }

    out = attention_forward(x, params, heads=heads, kv_heads=kv_heads, dim_head=dim_head)
    out = jax.block_until_ready(out)

    ref = reference_forward(x, params, heads=heads, kv_heads=kv_heads, dim_head=dim_head)
    np.testing.assert_allclose(np.asarray(out), np.asarray(ref), rtol=2e-2, atol=2e-2)

    print("KERNEL_OK")
</pallas_src>

<mosaic_0001>
module attributes {stable_mosaic.version = 11 : i64} {
  func.func @kernel(%arg0: i32, %arg1: i32, %arg2: memref<16x32xf32, #tpu.memory_space<vmem>>, %arg3: memref<1x32xf32, #tpu.memory_space<vmem>>, %arg4: memref<32x128xf32, #tpu.memory_space<vmem>>, %arg5: memref<16x128xf32, #tpu.memory_space<vmem>>) attributes {dimension_semantics = [#tpu.dimension_semantics<parallel>, #tpu.dimension_semantics<parallel>], iteration_bounds = array<i64: 1, 1>, scalar_prefetch = 0 : i64, scratch_operands = 0 : i64, tpu.core_type = #tpu.core_type<tc>, window_params = [{transform_indices = @transform_0, window_bounds = array<i64: 16, 32>}, {pipeline_mode = #tpu.pipeline_mode<synchronous>, transform_indices = @transform_1, window_bounds = array<i64: 1, 32>}, {transform_indices = @transform_2, window_bounds = array<i64: 32, 128>}, {transform_indices = @transform_3, window_bounds = array<i64: 16, 128>}]} {
    %c0 = arith.constant 0 : index
    %c0_0 = arith.constant 0 : index
    %0 = vector.load %arg2[%c0, %c0_0] : memref<16x32xf32, #tpu.memory_space<vmem>>, vector<16x32xf32>
    %1 = arith.mulf %0, %0 : vector<16x32xf32>
    %cst = arith.constant dense<0.000000e+00> : vector<16xf32>
    %2 = vector.multi_reduction <add>, %1, %cst [1] : vector<16x32xf32> to vector<16xf32>
    %3 = vector.shape_cast %2 : vector<16xf32> to vector<16x1xf32>
    %cst_1 = arith.constant 3.200000e+01 : f32
    %4 = vector.broadcast %cst_1 : f32 to vector<16x1xf32>
    %5 = arith.divf %3, %4 : vector<16x1xf32>
    %cst_2 = arith.constant 1.1920929E-7 : f32
    %6 = vector.broadcast %cst_2 : f32 to vector<16x1xf32>
    %7 = arith.addf %5, %6 : vector<16x1xf32>
    %8 = math.rsqrt %7 : vector<16x1xf32>
    %9 = vector.broadcast %8 : vector<16x1xf32> to vector<16x32xf32>
    %10 = arith.mulf %0, %9 : vector<16x32xf32>
    %c0_3 = arith.constant 0 : index
    %c0_4 = arith.constant 0 : index
    %11 = vector.load %arg3[%c0_3, %c0_4] : memref<1x32xf32, #tpu.memory_space<vmem>>, vector<1x32xf32>
    %12 = vector.broadcast %11 : vector<1x32xf32> to vector<16x32xf32>
    %13 = arith.mulf %10, %12 : vector<16x32xf32>
    %c0_5 = arith.constant 0 : index
    %c0_6 = arith.constant 0 : index
    %14 = vector.load %arg4[%c0_5, %c0_6] : memref<32x128xf32, #tpu.memory_space<vmem>>, vector<32x128xf32>
    %cst_7 = arith.constant dense<0.000000e+00> : vector<16x128xf32>
    %15 = tpu.matmul %13, %14, %cst_7 {dimension_numbers = #tpu.dot_dimension_numbers<[1], [0], [0], [1], [0, 0, 1, 1], [], []>} : vector<16x32xf32>, vector<32x128xf32>, vector<16x128xf32> -> vector<16x128xf32>
    %c0_8 = arith.constant 0 : index
    %c0_9 = arith.constant 0 : index
    %16 = vector.load %arg5[%c0_8, %c0_9] : memref<16x128xf32, #tpu.memory_space<vmem>>, vector<16x128xf32>
    tpu.vector_store %arg5[%c0_8, %c0_9], %15 {strides = array<i32>} : memref<16x128xf32, #tpu.memory_space<vmem>>, vector<16x128xf32>,
    return
  }
  func.func @transform_0(%arg0: i32, %arg1: i32) -> (i32, i32) {
    %c0_i32 = arith.constant 0 : i32
    %c0_i32_0 = arith.constant 0 : i32
    return %arg0, %c0_i32 : i32, i32
  }
  func.func @transform_1(%arg0: i32, %arg1: i32) -> (i32, i32) {
    %c0_i32 = arith.constant 0 : i32
    %c0_i32_0 = arith.constant 0 : i32
    %c0_i32_1 = arith.constant 0 : i32
    return %c0_i32, %c0_i32_0 : i32, i32
  }
  func.func @transform_2(%arg0: i32, %arg1: i32) -> (i32, i32) {
    %c0_i32 = arith.constant 0 : i32
    %c0_i32_0 = arith.constant 0 : i32
    return %c0_i32, %arg1 : i32, i32
  }
  func.func @transform_3(%arg0: i32, %arg1: i32) -> (i32, i32) {
    %c0_i32 = arith.constant 0 : i32
    return %arg0, %arg1 : i32, i32
  }
}

</mosaic_0001>

<bundles_post_ra>
// kernel: tpu_custom_call.1
= control target key start
LH: loop header
LB: loop body
LE: loop exit
PB: predicated region body
PF: predicated region fallthrough
CT: control target
= control target key end

     0   :  { %8 = vsyncpa [#allocation3], 0  ;;  %s363_s0 = inlined_call_operand.hbm [shape: f32[16,32], index: 0, kind: input, shape index: {}]   ;;  %s364_s1 = inlined_call_operand.vmem [shape: f32[1,32], index: 1, kind: input, shape index: {}]   ;;  %s365_s2 = inlined_call_operand.hbm [shape: f32[32,128], index: 2, kind: input, shape index: {}]   ;;  %s366_s3 = inlined_call_operand.hbm [shape: f32[16,128], index: 3, kind: output, shape index: {}]  }
   0x1   :  { %9 = vsyncpa [#allocation6], 0 }
   0x2   :  { %10 = vsyncpa [#allocation4], 0  ;;  %s286_s12 = smov [#allocation2]   ;;  %s214_s16 = scalar_lea.hbm %s363_s0, 256 }
   0x3   :  { %s16_s13 = sshll.u32 %s286_s12, 4  ;;  %p215_p0 = scmp.ne.s32.totalorder %s363_s0, %s214_s16  ;;  %s17_s13 = int_to_ptr.vmem [resolvable:$true] %s16_s13 }
   0x4   :  { %p218_p1 = scmp.lt.u32.totalorder %s214_s16, %s363_s0 }
   0x6   :  { %p220_p2 = pnand %p218_p1, %p215_p0 }
   0x8   :  { %223 = shalt.err (!%p220_p2)
}
   0x9   :  { %s224_s21 = scalar_lea.vmem %s17_s13, 256  ;;  %p229_p4 = scmp.lt.s32.totalorder %s17_s13, %s17_s13 }
   0xa   :  { %p225_p3 = scmp.ne.s32.totalorder %s17_s13, %s224_s21  ;;  %p230_p5 = scmp.lt.s32.totalorder %s224_s21, %s224_s21 }
   0xc   :  { %p231_p6 = por %p230_p5, %p229_p4 }
   0xe   :  { %p232_p7 = pnand %p231_p6, %p225_p3 }
  0x10   :  { %235 = shalt.err (!%p232_p7)
}
  0x11   :  { %s287_s22 = smov 128   ;;  %s288_s23 = smov 8  }
  0x12   :  { %22 = dma.hbm_to_vmem [thread:$0]  %s363_s0, 256, %s17_s13, [#allocation3], %s287_s22, %s287_s22, %s288_s23  }
  0x13   :  { %s289_s26 = smov [#allocation5]   ;;  %s236_s30 = scalar_lea.hbm %s365_s2, 512 }
  0x14   :  { %s30_s27 = sshll.u32 %s289_s26, 4  ;;  %p237_p8 = scmp.ne.s32.totalorder %s365_s2, %s236_s30  ;;  %s31_s27 = int_to_ptr.vmem [resolvable:$true] %s30_s27 }
  0x15   :  { %p240_p9 = scmp.lt.u32.totalorder %s236_s30, %s365_s2 }
  0x17   :  { %p242_p10 = pnand %p240_p9, %p237_p8 }
  0x19   :  { %245 = shalt.err (!%p242_p10)
}
  0x1a   :  { %s246_s8 = scalar_lea.vmem %s31_s27, 512  ;;  %p251_p12 = scmp.lt.s32.totalorder %s31_s27, %s31_s27 }
  0x1b   :  { %p247_p11 = scmp.ne.s32.totalorder %s31_s27, %s246_s8  ;;  %p252_p13 = scmp.lt.s32.totalorder %s246_s8, %s246_s8 }
  0x1d   :  { %p253_p0 = por %p252_p13, %p251_p12 }
  0x1f   :  { %p254_p1 = pnand %p253_p0, %p247_p11 }
  0x21   :  { %257 = shalt.err (!%p254_p1)
}
  0x22   :  { %36 = dma.hbm_to_vmem [thread:$0]  %s365_s2, 512, %s31_s27, [#allocation6], %s287_s22, %s287_s22, %s288_s23  }
  0x23   :  { %280 = dma.done.wait [#allocation3], 256  }
  0x24   :  { %281 = vsyncadd [#allocation3], 4294967040 }
  0x25   :  { %282 = dma.done.wait [#allocation6], 512  }
  0x26   :  { %283 = vsyncadd [#allocation6], 4294966784  ;;  %v43_v0 = vld [vmem:[#allocation2] sm:$0xff]  ;;  %vm47_vm0 = vcmask 261120   ;;  %v44_v1 = vld [vmem:[#allocation2 + $0x8] sm:$0xff]  ;;  %s290_s11 = smov [#allocation7]  }
  0x27   :  { %v45_v2 = vmul.f32 %v43_v0, %v43_v0  ;;  %v46_v3 = vmul.f32 %v44_v1, %v44_v1  ;;  %v72_v6 = vld [vmem:[#allocation5] sm:$0xff]  ;;  %v73_v7 = vld [vmem:[#allocation5 + $0x8] sm:$0xff]  ;;  %v74_v8 = vld [vmem:[#allocation5 + $0x10] sm:$0xff]  ;;  %s164_s12 = sshll.u32 %s290_s11, 4  ;;  %s165_s12 = int_to_ptr.vmem [resolvable:$true] %s164_s12 }
  0x28   :  { %v197_v9 = vpack.c.bf16 %v73_v7, %v72_v6  ;;  %v75_v10 = vld [vmem:[#allocation5 + $0x18] sm:$0xff]  ;;  %v177_v19 = vld [vmem:[%s364_s1] ss:$0 sm:$0xff]  ;;  %s258_s13 = scalar_lea.vmem %s165_s12, 256  ;;  %p263_p3 = scmp.lt.s32.totalorder %s165_s12, %s165_s12 }
  0x29   :  { %v48_v4 = vsel %vm47_vm0, %v45_v2, 0.0  ;;  %v51_v5 = vsel %vm47_vm0, %v46_v3, 0.0  ;;  %v201_v11 = vpack.c.bf16 %v75_v10, %v74_v8  ;;  %p259_p2 = scmp.ne.s32.totalorder %s165_s12, %s258_s13  ;;  %p264_p4 = scmp.lt.s32.totalorder %s258_s13, %s258_s13 }
  0x2a   :  { %49 = vadd.xlane.f32.xlu0 %v48_v4  ;;  %198 = vmatprep.subr.bf16.mxu0 %v197_v9 }
  0x2b   :  { %200 = vmatpush3.bf16.msra.mxu0 %v197_v9  ;;  %p265_p5 = por %p264_p4, %p263_p3 }
  0x2c   :  { %202 = vmatprep.subr.bf16.mxu0 %v201_v11 }
  0x2d   :  { %p266_p6 = pnand %p265_p5, %p259_p2 }
  0x2e   :  { %52 = vadd.xlane.f32.xlu0 %v51_v5 }
  0x2f   :  { %204 = vmatpush3.bf16.msra.mxu0 %v201_v11 }
  0xb7   :  { %v50_v12 = vpop.xlane.xlu0 %49 }
  0xb8   :  { %v55_v13 = vmul.f32 0.03125, %v50_v12 }
  0xba   :  { %v57_v14 = vadd.f32 1.1920929e-07, %v55_v13 }
  0xbb   :  { %v53_v15 = vpop.xlane.xlu0 %52 }
  0xbc   :  { %210 = vrsqrt.f32 %v57_v14  ;;  %v56_v16 = vmul.f32 0.03125, %v53_v15 }
  0xbe   :  { %v58_v17 = vadd.f32 1.1920929e-07, %v56_v16 }
  0xc0   :  { %212 = vrsqrt.f32 %v58_v17 }
  0xc6   :  { %v211_v18 = vpop.eup %210 }
  0xc7   :  { %v61_v20 = vmul.f32 %v211_v18, %v43_v0 }
  0xc9   :  { %v70_v21 = vmul.f32 %v177_v19, %v61_v20 }
  0xca   :  { %v213_v22 = vpop.eup %212 }
  0xcb   :  { %v62_v23 = vmul.f32 %v213_v22, %v44_v1  ;;  %194 = vmatprep.mubr.msk.f32.mxu0 %vm47_vm0, %v70_v21 }
  0xcd   :  { %v71_v24 = vmul.f32 %v177_v19, %v62_v23 }
  0xcf   :  { %195 = vmatmul.mubr.msk.f32.vlgmr.msra.gmra.mrb[0].mxu0 %vm47_vm0, %v71_v24 }
 0x1a2   :  { %v196_v25 = vpop.f32.mrb[0].mxu0 }
 0x1a3   :  { %158 = vst [vmem:[#allocation7 + $0x8] sm:$0xff] %v196_v25  ;;  %v148_v26 = vpop.f32.mrb[1].mxu0 }
 0x1a4   :  { %157 = vst [vmem:[#allocation7] sm:$0xff] %v148_v26 }
 0x1a5   :  { %269 = shalt.err (!%p266_p6)
}
 0x1a6   :  { %s270_s15 = scalar_lea.hbm %s366_s3, 256 }
 0x1a7   :  { %p271_p7 = scmp.ne.s32.totalorder %s366_s3, %s270_s15  ;;  %p274_p8 = scmp.lt.u32.totalorder %s270_s15, %s366_s3 }
 0x1a9   :  { %p276_p9 = pnand %p274_p8, %p271_p7 }
 0x1ab   :  { %279 = shalt.err (!%p276_p9)
}
 0x1ac   :  { %170 = dma.vmem_to_hbm [thread:$0]  %s165_s12, 256, %s366_s3, [#allocation4], %s287_s22, %s287_s22, %s288_s23  }
 0x1ad   :  { %284 = dma.done.wait [#allocation4], 256  }
 0x1ae   :  { %285 = vsyncadd [#allocation4], 4294967040 }
 0x1af   :  { %174 = vsyncpa [#allocation3], 1 }
 0x1b0   :  { %175 = vsyncpa [#allocation6], 1 }
 0x1b1   :  { %176 = vsyncpa [#allocation4], 1 }

</bundles_post_ra>
